<compile_context>
chip_gen: v6e
topology: v6e:2x2x1
jax: 0.10.0
libtpu: 0.0.40
codegen_flags: <defaults>
</compile_context>

<pallas_src>
import jax
import jax.numpy as jnp
from jax.experimental import pallas as pl
from jax.experimental.pallas import tpu as pltpu


def _selector_kernel(x1_ref, x2_ref, w1_ref, b1_ref, w2_ref, b2_ref,
                     wc_ref, bc_ref, out_ref):
    # Gate branch projections: two separate MXU calls, f32 accumulate.
    u = jnp.dot(x1_ref[...], w1_ref[...],
                preferred_element_type=jnp.float32) + b1_ref[...]
    v = jnp.dot(x2_ref[...], w2_ref[...],
                preferred_element_type=jnp.float32) + b2_ref[...]

    # ScalableGate combine (sigmoid -> EUP, mul/add -> VPU, all f32).
    g = jax.nn.sigmoid(u + v)
    h = v + g * (u - v)                       # == g*u + (1-g)*v

    # Selector head Linear(out_dim, 1): contract over out_dim with the batch
    # tile landing on the lane axis -> (1, tile_b), lane-dense unmasked store.
    scores = jax.lax.dot_general(
        wc_ref[...], h.astype(wc_ref.dtype),
        (((1,), (1,)), ((), ())),
        preferred_element_type=jnp.float32)    # (1, tile_b)
    out_ref[...] = (scores + bc_ref[...]).reshape(out_ref.shape).astype(out_ref.dtype)


def prepare_selector_params(w1, b1, w2, b2, wc, bc, *, compute_dtype=jnp.float32):
    """One-time weight preprocessing (call at load time; keep result as state)."""
    E, O = w1.shape
    return (
        jnp.asarray(w1, compute_dtype),                 # (E, O)
        jnp.asarray(b1, jnp.float32).reshape(1, O),     # (1, O)
        jnp.asarray(w2, compute_dtype),                 # (E, O)
        jnp.asarray(b2, jnp.float32).reshape(1, O),     # (1, O)
        jnp.asarray(wc, compute_dtype).reshape(1, O),   # (1, O)  (Wc as a row)
        jnp.asarray(bc, jnp.float32).reshape(1, 1),     # (1, 1)
    )


def _build_call(tile_b, num_tiles, E, O, vmem_limit_bytes, single_buffer_consts):
    def const_spec(shape):
        idx = lambda i, _n=len(shape): (0,) * _n
        if single_buffer_consts:
            # Grid-invariant operands: no point double-buffering them.
            return pl.BlockSpec(shape, idx, pipeline_mode=pl.Buffered(1))
        return pl.BlockSpec(shape, idx)

    x_spec = pl.BlockSpec((tile_b, E), lambda i: (i, 0))
    in_specs = [
        x_spec, x_spec,
        const_spec((E, O)), const_spec((1, O)),
        const_spec((E, O)), const_spec((1, O)),
        const_spec((1, O)), const_spec((1, 1)),
    ]
    out_spec = pl.BlockSpec((1, 1, tile_b), lambda i: (i, 0, 0))

    return pl.pallas_call(
        _selector_kernel,
        out_shape=jax.ShapeDtypeStruct((num_tiles, 1, tile_b), jnp.float32),
        grid_spec=pltpu.PrefetchScalarGridSpec(
            num_scalar_prefetch=0,
            grid=(num_tiles,),
            in_specs=in_specs,
            out_specs=out_spec,
        ),
        compiler_params=pltpu.CompilerParams(
            dimension_semantics=("parallel",),
            vmem_limit_bytes=vmem_limit_bytes),
    )


def selector_classifier_fwd(x1, x2, params, *, tile_b=None):
    """score = classifier(gate(x1, x2)); returns (B, 1) float32."""
    w1, b1, w2, b2, wc_row, bc = params
    B, E = x1.shape
    O = w1.shape[1]

    if tile_b is None:
        # >= 2 grid steps whenever B > 8 so the "parallel" batch axis can be
        # sharded across v7x's two TensorCores; cap at 256 rows per tile.
        tile_b = min(256, max(8, ((pl.cdiv(B, 2) + 7) // 8) * 8))
    num_tiles = pl.cdiv(B, tile_b)
    b_pad = num_tiles * tile_b

    cd = w1.dtype
    if x1.dtype != cd:
        x1 = x1.astype(cd)
    if x2.dtype != cd:
        x2 = x2.astype(cd)
    if b_pad != B:
        # Ragged batch: zero-pad the last tile; padded rows sliced off below.
        pad = ((0, b_pad - B), (0, 0))
        x1 = jnp.pad(x1, pad)
        x2 = jnp.pad(x2, pad)

    itemsize = jnp.dtype(cd).itemsize
    est = (2 * 2 * tile_b * E * itemsize              # x1/x2 tiles (double-buffered)
           + 2 * (2 * E * O + 3 * O + 1) * itemsize   # weights/biases (worst case 2x)
           + 2 * tile_b * 4                           # output tiles
           + 8 * tile_b * O * 4)                      # u/v/g/h working-set headroom
    # Explicit limit: v5e's scoped default is only 16 MiB; stay well under
    # v7x's 64 MiB physical VMEM.
    vmem_limit_bytes = int(min(48 * 2 ** 20, max(16 * 2 ** 20, 4 * est)))

    args = (x1, x2, w1, b1, w2, b2, wc_row, bc)
    try:
        out_tiles = _build_call(tile_b, num_tiles, E, O, vmem_limit_bytes,
                                single_buffer_consts=True)(*args)
    except Exception:
        # pipeline_mode=pl.Buffered(1) unsupported on this jax version; fall
        # back to default double-buffered weights (correctness identical).
        out_tiles = _build_call(tile_b, num_tiles, E, O, vmem_limit_bytes,
                                single_buffer_consts=False)(*args)

    return out_tiles.reshape(b_pad, 1)[:B]


def reference(x1, x2, w1, b1, w2, b2, wc, bc):
    u = x1 @ w1 + b1
    v = x2 @ w2 + b2
    g = jax.nn.sigmoid(u + v)
    h = g * u + (1.0 - g) * v
    return h @ wc + bc


if __name__ == "__main__":
    # SelectorClassifier(embed_dim=32, out_dim=32) -> Linear(32, 1), batch=16.
    B, E, O = 16, 32, 32

    key = jax.random.PRNGKey(0)
    k = jax.random.split(key, 8)

    # Deterministic synthetic parameters (Glorot-ish scale), not a checkpoint.
    # TODO(synk): load_from_meta / load_from_checkpoint / load_group (torch.load
    # of checkpoint files) have no in-kernel equivalent; params are synthesized.
    x1 = jax.random.normal(k[0], (B, E), dtype=jnp.float32)
    x2 = jax.random.normal(k[1], (B, E), dtype=jnp.float32)
    w1 = jax.random.normal(k[2], (E, O), dtype=jnp.float32) * (1.0 / E) ** 0.5
    b1 = jax.random.normal(k[3], (1, O), dtype=jnp.float32) * 0.01
    w2 = jax.random.normal(k[4], (E, O), dtype=jnp.float32) * (1.0 / E) ** 0.5
    b2 = jax.random.normal(k[5], (1, O), dtype=jnp.float32) * 0.01
    wc = jax.random.normal(k[6], (O, 1), dtype=jnp.float32) * (1.0 / O) ** 0.5
    bc = jax.random.normal(k[7], (1, 1), dtype=jnp.float32) * 0.01

    params = prepare_selector_params(w1, b1, w2, b2, wc, bc)   # load-time, once
    out = jax.block_until_ready(selector_classifier_fwd(x1, x2, params))

    ref = jax.block_until_ready(reference(x1, x2, w1, b1, w2, b2, wc, bc))
    assert out.shape == (B, 1), out.shape
    # Full-f32 kernel path; tolerance only covers possible default-precision
    # (bf16-pass) matmuls inside the XLA reference.
    assert jnp.allclose(out, ref, atol=2e-2, rtol=2e-2), (
        f"max abs err {jnp.max(jnp.abs(out - ref))}")

    print("KERNEL_OK")
</pallas_src>

<mosaic_0001>
module attributes {stable_mosaic.version = 11 : i64} {
  func.func @_selector_kernel(%arg0: i32, %arg1: memref<8x32xf32, #tpu.memory_space<vmem>>, %arg2: memref<8x32xf32, #tpu.memory_space<vmem>>, %arg3: memref<32x32xf32, #tpu.memory_space<vmem>>, %arg4: memref<1x32xf32, #tpu.memory_space<vmem>>, %arg5: memref<32x32xf32, #tpu.memory_space<vmem>>, %arg6: memref<1x32xf32, #tpu.memory_space<vmem>>, %arg7: memref<1x32xf32, #tpu.memory_space<vmem>>, %arg8: memref<1x1xf32, #tpu.memory_space<vmem>>, %arg9: memref<1x1x8xf32, #tpu.memory_space<vmem>>) attributes {dimension_semantics = [#tpu.dimension_semantics<parallel>], iteration_bounds = array<i64: 2>, scalar_prefetch = 0 : i64, scratch_operands = 0 : i64, tpu.core_type = #tpu.core_type<tc>, window_params = [{transform_indices = @transform_0, window_bounds = array<i64: 8, 32>}, {transform_indices = @transform_1, window_bounds = array<i64: 8, 32>}, {pipeline_mode = #tpu.pipeline_mode<synchronous>, transform_indices = @transform_2, window_bounds = array<i64: 32, 32>}, {pipeline_mode = #tpu.pipeline_mode<synchronous>, transform_indices = @transform_3, window_bounds = array<i64: 1, 32>}, {pipeline_mode = #tpu.pipeline_mode<synchronous>, transform_indices = @transform_4, window_bounds = array<i64: 32, 32>}, {pipeline_mode = #tpu.pipeline_mode<synchronous>, transform_indices = @transform_5, window_bounds = array<i64: 1, 32>}, {pipeline_mode = #tpu.pipeline_mode<synchronous>, transform_indices = @transform_6, window_bounds = array<i64: 1, 32>}, {pipeline_mode = #tpu.pipeline_mode<synchronous>, transform_indices = @transform_7, window_bounds = array<i64: 1, 1>}, {transform_indices = @transform_8, window_bounds = array<i64: 1, 1, 8>}]} {
    %c0 = arith.constant 0 : index
    %c0_0 = arith.constant 0 : index
    %0 = vector.load %arg1[%c0, %c0_0] : memref<8x32xf32, #tpu.memory_space<vmem>>, vector<8x32xf32>
    %c0_1 = arith.constant 0 : index
    %c0_2 = arith.constant 0 : index
    %1 = vector.load %arg3[%c0_1, %c0_2] : memref<32x32xf32, #tpu.memory_space<vmem>>, vector<32x32xf32>
    %cst = arith.constant dense<0.000000e+00> : vector<8x32xf32>
    %2 = tpu.matmul %0, %1, %cst {dimension_numbers = #tpu.dot_dimension_numbers<[1], [0], [0], [1], [0, 0, 1, 1], [], []>} : vector<8x32xf32>, vector<32x32xf32>, vector<8x32xf32> -> vector<8x32xf32>
    %c0_3 = arith.constant 0 : index
    %c0_4 = arith.constant 0 : index
    %3 = vector.load %arg4[%c0_3, %c0_4] : memref<1x32xf32, #tpu.memory_space<vmem>>, vector<1x32xf32>
    %4 = vector.broadcast %3 : vector<1x32xf32> to vector<8x32xf32>
    %5 = arith.addf %2, %4 : vector<8x32xf32>
    %c0_5 = arith.constant 0 : index
    %c0_6 = arith.constant 0 : index
    %6 = vector.load %arg2[%c0_5, %c0_6] : memref<8x32xf32, #tpu.memory_space<vmem>>, vector<8x32xf32>
    %c0_7 = arith.constant 0 : index
    %c0_8 = arith.constant 0 : index
    %7 = vector.load %arg5[%c0_7, %c0_8] : memref<32x32xf32, #tpu.memory_space<vmem>>, vector<32x32xf32>
    %cst_9 = arith.constant dense<0.000000e+00> : vector<8x32xf32>
    %8 = tpu.matmul %6, %7, %cst_9 {dimension_numbers = #tpu.dot_dimension_numbers<[1], [0], [0], [1], [0, 0, 1, 1], [], []>} : vector<8x32xf32>, vector<32x32xf32>, vector<8x32xf32> -> vector<8x32xf32>
    %c0_10 = arith.constant 0 : index
    %c0_11 = arith.constant 0 : index
    %9 = vector.load %arg6[%c0_10, %c0_11] : memref<1x32xf32, #tpu.memory_space<vmem>>, vector<1x32xf32>
    %10 = vector.broadcast %9 : vector<1x32xf32> to vector<8x32xf32>
    %11 = arith.addf %8, %10 : vector<8x32xf32>
    %12 = arith.addf %5, %11 : vector<8x32xf32>
    %13 = arith.negf %12 : vector<8x32xf32>
    %14 = math.exp %13 : vector<8x32xf32>
    %cst_12 = arith.constant 1.000000e+00 : f32
    %15 = vector.broadcast %cst_12 : f32 to vector<8x32xf32>
    %16 = arith.addf %15, %14 : vector<8x32xf32>
    %17 = arith.divf %15, %16 : vector<8x32xf32>
    %18 = arith.subf %5, %11 : vector<8x32xf32>
    %19 = arith.mulf %17, %18 : vector<8x32xf32>
    %20 = arith.addf %11, %19 : vector<8x32xf32>
    %c0_13 = arith.constant 0 : index
    %c0_14 = arith.constant 0 : index
    %21 = vector.load %arg7[%c0_13, %c0_14] : memref<1x32xf32, #tpu.memory_space<vmem>>, vector<1x32xf32>
    %cst_15 = arith.constant dense<0.000000e+00> : vector<1x8xf32>
    %22 = tpu.matmul %21, %20, %cst_15 {dimension_numbers = #tpu.dot_dimension_numbers<[1], [1], [0], [0], [0, 0, 1, 0], [], []>} : vector<1x32xf32>, vector<8x32xf32>, vector<1x8xf32> -> vector<1x8xf32>
    %c0_16 = arith.constant 0 : index
    %c0_17 = arith.constant 0 : index
    %23 = vector.load %arg8[%c0_16, %c0_17] : memref<1x1xf32, #tpu.memory_space<vmem>>, vector<1x1xf32>
    %24 = vector.broadcast %23 : vector<1x1xf32> to vector<1x8xf32>
    %25 = arith.addf %22, %24 : vector<1x8xf32>
    %26 = vector.shape_cast %25 : vector<1x8xf32> to vector<1x1x8xf32>
    %c0_18 = arith.constant 0 : index
    %c0_19 = arith.constant 0 : index
    %c0_20 = arith.constant 0 : index
    %27 = vector.load %arg9[%c0_18, %c0_19, %c0_20] : memref<1x1x8xf32, #tpu.memory_space<vmem>>, vector<1x1x8xf32>
    tpu.vector_store %arg9[%c0_18, %c0_19, %c0_20], %26 {strides = array<i32>} : memref<1x1x8xf32, #tpu.memory_space<vmem>>, vector<1x1x8xf32>,
    return
  }
  func.func @transform_0(%arg0: i32) -> (i32, i32) {
    %c0_i32 = arith.constant 0 : i32
    %c0_i32_0 = arith.constant 0 : i32
    return %arg0, %c0_i32 : i32, i32
  }
  func.func @transform_1(%arg0: i32) -> (i32, i32) {
    %c0_i32 = arith.constant 0 : i32
    %c0_i32_0 = arith.constant 0 : i32
    return %arg0, %c0_i32 : i32, i32
  }
  func.func @transform_2(%arg0: i32) -> (i32, i32) {
    %c0_i32 = arith.constant 0 : i32
    %c0_i32_0 = arith.constant 0 : i32
    %c0_i32_1 = arith.constant 0 : i32
    return %c0_i32, %c0_i32_0 : i32, i32
  }
  func.func @transform_3(%arg0: i32) -> (i32, i32) {
    %c0_i32 = arith.constant 0 : i32
    %c0_i32_0 = arith.constant 0 : i32
    %c0_i32_1 = arith.constant 0 : i32
    return %c0_i32, %c0_i32_0 : i32, i32
  }
  func.func @transform_4(%arg0: i32) -> (i32, i32) {
    %c0_i32 = arith.constant 0 : i32
    %c0_i32_0 = arith.constant 0 : i32
    %c0_i32_1 = arith.constant 0 : i32
    return %c0_i32, %c0_i32_0 : i32, i32
  }
  func.func @transform_5(%arg0: i32) -> (i32, i32) {
    %c0_i32 = arith.constant 0 : i32
    %c0_i32_0 = arith.constant 0 : i32
    %c0_i32_1 = arith.constant 0 : i32
    return %c0_i32, %c0_i32_0 : i32, i32
  }
  func.func @transform_6(%arg0: i32) -> (i32, i32) {
    %c0_i32 = arith.constant 0 : i32
    %c0_i32_0 = arith.constant 0 : i32
    %c0_i32_1 = arith.constant 0 : i32
    return %c0_i32, %c0_i32_0 : i32, i32
  }
  func.func @transform_7(%arg0: i32) -> (i32, i32) {
    %c0_i32 = arith.constant 0 : i32
    %c0_i32_0 = arith.constant 0 : i32
    %c0_i32_1 = arith.constant 0 : i32
    return %c0_i32, %c0_i32_0 : i32, i32
  }
  func.func @transform_8(%arg0: i32) -> (i32, i32, i32) {
    %c0_i32 = arith.constant 0 : i32
    %c0_i32_0 = arith.constant 0 : i32
    %c0_i32_1 = arith.constant 0 : i32
    return %arg0, %c0_i32, %c0_i32_0 : i32, i32, i32
  }
}

module attributes {stable_mosaic.version = 11 : i64} {
  func.func @_selector_kernel(%arg0: i32, %arg1: memref<8x32xf32, #tpu.memory_space<vmem>>, %arg2: memref<8x32xf32, #tpu.memory_space<vmem>>, %arg3: memref<32x32xf32, #tpu.memory_space<vmem>>, %arg4: memref<1x32xf32, #tpu.memory_space<vmem>>, %arg5: memref<32x32xf32, #tpu.memory_space<vmem>>, %arg6: memref<1x32xf32, #tpu.memory_space<vmem>>, %arg7: memref<1x32xf32, #tpu.memory_space<vmem>>, %arg8: memref<1x1xf32, #tpu.memory_space<vmem>>, %arg9: memref<1x1x8xf32, #tpu.memory_space<vmem>>) attributes {dimension_semantics = [#tpu.dimension_semantics<parallel>], iteration_bounds = array<i64: 2>, scalar_prefetch = 0 : i64, scratch_operands = 0 : i64, tpu.core_type = #tpu.core_type<tc>, window_params = [{transform_indices = @transform_0, window_bounds = array<i64: 8, 32>}, {transform_indices = @transform_1, window_bounds = array<i64: 8, 32>}, {pipeline_mode = #tpu.pipeline_mode<synchronous>, transform_indices = @transform_2, window_bounds = array<i64: 32, 32>}, {pipeline_mode = #tpu.pipeline_mode<synchronous>, transform_indices = @transform_3, window_bounds = array<i64: 1, 32>}, {pipeline_mode = #tpu.pipeline_mode<synchronous>, transform_indices = @transform_4, window_bounds = array<i64: 32, 32>}, {pipeline_mode = #tpu.pipeline_mode<synchronous>, transform_indices = @transform_5, window_bounds = array<i64: 1, 32>}, {pipeline_mode = #tpu.pipeline_mode<synchronous>, transform_indices = @transform_6, window_bounds = array<i64: 1, 32>}, {pipeline_mode = #tpu.pipeline_mode<synchronous>, transform_indices = @transform_7, window_bounds = array<i64: 1, 1>}, {transform_indices = @transform_8, window_bounds = array<i64: 1, 1, 8>}]} {
    %c0 = arith.constant 0 : index
    %c0_0 = arith.constant 0 : index
    %0 = vector.load %arg1[%c0, %c0_0] : memref<8x32xf32, #tpu.memory_space<vmem>>, vector<8x32xf32>
    %c0_1 = arith.constant 0 : index
    %c0_2 = arith.constant 0 : index
    %1 = vector.load %arg3[%c0_1, %c0_2] : memref<32x32xf32, #tpu.memory_space<vmem>>, vector<32x32xf32>
    %cst = arith.constant dense<0.000000e+00> : vector<8x32xf32>
    %2 = tpu.matmul %0, %1, %cst {dimension_numbers = #tpu.dot_dimension_numbers<[1], [0], [0], [1], [0, 0, 1, 1], [], []>} : vector<8x32xf32>, vector<32x32xf32>, vector<8x32xf32> -> vector<8x32xf32>
    %c0_3 = arith.constant 0 : index
    %c0_4 = arith.constant 0 : index
    %3 = vector.load %arg4[%c0_3, %c0_4] : memref<1x32xf32, #tpu.memory_space<vmem>>, vector<1x32xf32>
    %4 = vector.broadcast %3 : vector<1x32xf32> to vector<8x32xf32>
    %5 = arith.addf %2, %4 : vector<8x32xf32>
    %c0_5 = arith.constant 0 : index
    %c0_6 = arith.constant 0 : index
    %6 = vector.load %arg2[%c0_5, %c0_6] : memref<8x32xf32, #tpu.memory_space<vmem>>, vector<8x32xf32>
    %c0_7 = arith.constant 0 : index
    %c0_8 = arith.constant 0 : index
    %7 = vector.load %arg5[%c0_7, %c0_8] : memref<32x32xf32, #tpu.memory_space<vmem>>, vector<32x32xf32>
    %cst_9 = arith.constant dense<0.000000e+00> : vector<8x32xf32>
    %8 = tpu.matmul %6, %7, %cst_9 {dimension_numbers = #tpu.dot_dimension_numbers<[1], [0], [0], [1], [0, 0, 1, 1], [], []>} : vector<8x32xf32>, vector<32x32xf32>, vector<8x32xf32> -> vector<8x32xf32>
    %c0_10 = arith.constant 0 : index
    %c0_11 = arith.constant 0 : index
    %9 = vector.load %arg6[%c0_10, %c0_11] : memref<1x32xf32, #tpu.memory_space<vmem>>, vector<1x32xf32>
    %10 = vector.broadcast %9 : vector<1x32xf32> to vector<8x32xf32>
    %11 = arith.addf %8, %10 : vector<8x32xf32>
    %12 = arith.addf %5, %11 : vector<8x32xf32>
    %13 = arith.negf %12 : vector<8x32xf32>
    %14 = math.exp %13 : vector<8x32xf32>
    %cst_12 = arith.constant 1.000000e+00 : f32
    %15 = vector.broadcast %cst_12 : f32 to vector<8x32xf32>
    %16 = arith.addf %15, %14 : vector<8x32xf32>
    %17 = arith.divf %15, %16 : vector<8x32xf32>
    %18 = arith.subf %5, %11 : vector<8x32xf32>
    %19 = arith.mulf %17, %18 : vector<8x32xf32>
    %20 = arith.addf %11, %19 : vector<8x32xf32>
    %c0_13 = arith.constant 0 : index
    %c0_14 = arith.constant 0 : index
    %21 = vector.load %arg7[%c0_13, %c0_14] : memref<1x32xf32, #tpu.memory_space<vmem>>, vector<1x32xf32>
    %cst_15 = arith.constant dense<0.000000e+00> : vector<1x8xf32>
    %22 = tpu.matmul %21, %20, %cst_15 {dimension_numbers = #tpu.dot_dimension_numbers<[1], [1], [0], [0], [0, 0, 1, 0], [], []>} : vector<1x32xf32>, vector<8x32xf32>, vector<1x8xf32> -> vector<1x8xf32>
    %c0_16 = arith.constant 0 : index
    %c0_17 = arith.constant 0 : index
    %23 = vector.load %arg8[%c0_16, %c0_17] : memref<1x1xf32, #tpu.memory_space<vmem>>, vector<1x1xf32>
    %24 = vector.broadcast %23 : vector<1x1xf32> to vector<1x8xf32>
    %25 = arith.addf %22, %24 : vector<1x8xf32>
    %26 = vector.shape_cast %25 : vector<1x8xf32> to vector<1x1x8xf32>
    %c0_18 = arith.constant 0 : index
    %c0_19 = arith.constant 0 : index
    %c0_20 = arith.constant 0 : index
    %27 = vector.load %arg9[%c0_18, %c0_19, %c0_20] : memref<1x1x8xf32, #tpu.memory_space<vmem>>, vector<1x1x8xf32>
    tpu.vector_store %arg9[%c0_18, %c0_19, %c0_20], %26 {strides = array<i32>} : memref<1x1x8xf32, #tpu.memory_space<vmem>>, vector<1x1x8xf32>,
    return
  }
  func.func @transform_0(%arg0: i32) -> (i32, i32) {
    %c0_i32 = arith.constant 0 : i32
    %c0_i32_0 = arith.constant 0 : i32
    return %arg0, %c0_i32 : i32, i32
  }
  func.func @transform_1(%arg0: i32) -> (i32, i32) {
    %c0_i32 = arith.constant 0 : i32
    %c0_i32_0 = arith.constant 0 : i32
    return %arg0, %c0_i32 : i32, i32
  }
  func.func @transform_2(%arg0: i32) -> (i32, i32) {
    %c0_i32 = arith.constant 0 : i32
    %c0_i32_0 = arith.constant 0 : i32
    %c0_i32_1 = arith.constant 0 : i32
    return %c0_i32, %c0_i32_0 : i32, i32
  }
  func.func @transform_3(%arg0: i32) -> (i32, i32) {
    %c0_i32 = arith.constant 0 : i32
    %c0_i32_0 = arith.constant 0 : i32
    %c0_i32_1 = arith.constant 0 : i32
    return %c0_i32, %c0_i32_0 : i32, i32
  }
  func.func @transform_4(%arg0: i32) -> (i32, i32) {
    %c0_i32 = arith.constant 0 : i32
    %c0_i32_0 = arith.constant 0 : i32
    %c0_i32_1 = arith.constant 0 : i32
    return %c0_i32, %c0_i32_0 : i32, i32
  }
  func.func @transform_5(%arg0: i32) -> (i32, i32) {
    %c0_i32 = arith.constant 0 : i32
    %c0_i32_0 = arith.constant 0 : i32
    %c0_i32_1 = arith.constant 0 : i32
    return %c0_i32, %c0_i32_0 : i32, i32
  }
  func.func @transform_6(%arg0: i32) -> (i32, i32) {
    %c0_i32 = arith.constant 0 : i32
    %c0_i32_0 = arith.constant 0 : i32
    %c0_i32_1 = arith.constant 0 : i32
    return %c0_i32, %c0_i32_0 : i32, i32
  }
  func.func @transform_7(%arg0: i32) -> (i32, i32) {
    %c0_i32 = arith.constant 0 : i32
    %c0_i32_0 = arith.constant 0 : i32
    %c0_i32_1 = arith.constant 0 : i32
    return %c0_i32, %c0_i32_0 : i32, i32
  }
  func.func @transform_8(%arg0: i32) -> (i32, i32, i32) {
    %c0_i32 = arith.constant 0 : i32
    %c0_i32_0 = arith.constant 0 : i32
    %c0_i32_1 = arith.constant 0 : i32
    return %arg0, %c0_i32, %c0_i32_0 : i32, i32, i32
  }
}

</mosaic_0001>

<bundles_post_ra>
// kernel: tpu_custom_call.1
= control target key start
LH: loop header
LB: loop body
LE: loop exit
PB: predicated region body
PF: predicated region fallthrough
CT: control target
= control target key end

     0   :  { %s1413_s0 = inlined_call_operand.hbm [shape: f32[16,32], index: 0, kind: input, shape index: {}]   ;;  %s1414_s1 = inlined_call_operand.hbm [shape: f32[16,32], index: 1, kind: input, shape index: {}]   ;;  %s1415_s2 = inlined_call_operand.hbm [shape: f32[32,32], index: 2, kind: input, shape index: {}]   ;;  %s1416_s3 = inlined_call_operand.vmem [shape: f32[1,32], index: 3, kind: input, shape index: {}]   ;;  %s1417_s4 = inlined_call_operand.hbm [shape: f32[32,32], index: 4, kind: input, shape index: {}]   ;;  %s1418_s5 = inlined_call_operand.vmem [shape: f32[1,32], index: 5, kind: input, shape index: {}]   ;;  %s1419_s6 = inlined_call_operand.vmem [shape: f32[1,32], index: 6, kind: input, shape index: {}]   ;;  %s1420_s7 = inlined_call_operand.<no memory space> [shape: f32[1,1], index: 7, kind: input, shape index: {}]   ;;  %s1421_s8 = inlined_call_operand.hbm [shape: f32[2,1,8], index: 8, kind: output, shape index: {}]  }
   0x1   :  { %1427 = sst [smem:[#allocation19_spill]] %s1415_s2  ;;  %v13_v0 = vstv %s1420_s7 }
   0x2   :  { %1428 = sst [smem:[#allocation20_spill]] %s1417_s4  ;;  %14 = vst [vmem:[#allocation2] sm:$0x1] %v13_v0 }
   0x3   :  { %15 = vsyncpa [#allocation4], 0 }
   0x4   :  { %17 = vsyncpa [#allocation4 + $0x1], 0 }
   0x5   :  { %18 = vsyncpa [#allocation7], 0 }
   0x6   :  { %20 = vsyncpa [#allocation7 + $0x1], 0 }
   0x7   :  { %21 = vsyncpa [#allocation10], 0 }
   0x8   :  { %22 = vsyncpa [#allocation5], 0 }
   0x9   :  { %24 = vsyncpa [#allocation5 + $0x1], 0  ;;  %s1168_s29 = smov 0   ;;  %s1170_s30 = smov 0  }
   0xa   :  { %s1172_s9 = smov 0   ;;  %s1174_s10 = smov 0  }
   0xb LB: > { %1429 = sst [smem:[#allocation17_spill]] %s1104_s9  ;;  %s1189_s7 = sadd.s32 4294967295, %s1108_s10   ;;  %s1108_s10 = sphi %s1174_s10, %s1453_s10   ;;  %s1104_s9 = sphi %s1172_s9, %s1450_s9   ;;  %s1100_s30 = sphi %s1170_s30, %s1452_s30   ;;  %s1096_s29 = sphi %s1168_s29, %s1451_s29  }
   0xc   : > { %s779_s11 = sadd.s32 4294967294, %s1108_s10   ;;  %p50_p0 = scmp.ne.s32.totalorder %s1100_s30, %s1096_s29 }
   0xd   : > { %p1422_p1 = scmp.eq.s32.totalorder %s1189_s7, 0  ;;  %p232_p3 = scmp.eq.s32.totalorder %s779_s11, 1 }
   0xe   : > { %p780_p5 = scmp.ge.s32.totalorder %s1108_s10, 1  ;;  %p239_p7 = scmp.lt.s32.totalorder %s1108_s10, 3 }
   0xf   : > { %p1198_p4 = por %p1422_p1, %p50_p0  ;;  %p1203_p6 = por %p232_p3, %p50_p0 }
  0x10   : > { %p1208_p8 = pnand %p780_p5, %p239_p7  ;;  %s1110_s15 = smov [#allocation8]  }
  0x11   : > { %s1430_s12 = scalar_select %p1198_p4, 1, 0 }
  0x12   : > { %s1431_s13 = scalar_select %p1203_p6, 1, 0 }
  0x13   : > { %s1432_s14 = scalar_select %p1208_p8, 1, 0 }
  0x14   : > { %s251_s16 = sshll.u32 %s1110_s15, 4  ;;  %p856_p9 = pneg %p1208_p8  ;;  %s252_s16 = int_to_ptr.vmem [resolvable:$true] %s251_s16 }
  0x15   : > { %s1111_s18 = smov [#allocation9]   ;;  %s935_s20 = scalar_lea.vmem %s252_s16, 512 }
  0x16   : > { %p1217_p11 = pnand %p856_p9, %p1422_p1  ;;  %s267_s19 = sshll.u32 %s1111_s18, 4  ;;  %s268_s19 = int_to_ptr.vmem [resolvable:$true] %s267_s19 }
  0x17   : > { %p936_p13 = scmp.ne.s32.totalorder %s252_s16, %s935_s20  ;;  %p943_p5 = scmp.lt.s32.totalorder %s252_s16, %s252_s16 }
  0x18   : > { %p926_p12 = pneg %p1217_p11  ;;  %p944_p7 = scmp.lt.s32.totalorder %s935_s20, %s935_s20 }
  0x1a   : > { %p938_p0 = pnand %p936_p13, %p926_p12  ;;  %p945_p10 = por %p944_p7, %p943_p5 }
  0x1c   : > { %p939_p3 = pneg %p938_p0 }
  0x1e   : > { %p946_p9 = pnand %p945_p10, %p939_p3 }
  0x20   : > { %949 = shalt.err (!%p946_p9)
}
  0x21   : > { %s1112_s21 = smov 128   ;;  %s1113_s22 = smov 8  }
  0x22   : > { %s1434_s2 = sld [smem:[#allocation19_spill]]  ;;  %s961_s25 = scalar_lea.vmem %s268_s19, 512 }
  0x23   : > { %p962_p1 = scmp.ne.s32.totalorder %s268_s19, %s961_s25  ;;  %p969_p2 = scmp.lt.s32.totalorder %s268_s19, %s268_s19 }
  0x24   : > { %p970_p6 = scmp.lt.s32.totalorder %s961_s25, %s961_s25 }
  0x25   : > { %p964_p13 = pnand %p962_p1, %p926_p12 }
  0x26   : > { %p971_p5 = por %p970_p6, %p969_p2 }
  0x27   : > { %p965_p0 = pneg %p964_p13 }
  0x28   : > { %859 = dma.hbm_to_vmem [thread:$0]  (!%p1217_p11), %s1434_s2, 512, %s252_s16, [#allocation7], %s1112_s21, %s1112_s21, %s1113_s22  }
  0x29   : > { %p972_p10 = pnand %p971_p5, %p965_p0 }
  0x2b   : > { %975 = shalt.err (!%p972_p10)
}
  0x2c   : > { %s1435_s4 = sld [smem:[#allocation20_spill]]  ;;  %s1240_s28 = sadd.s32 1, %s1108_s10  }
  0x2d   : > { %s37_s11 = sadd.s32 1, %s1104_s9  ;;  %s34_s15 = ssub.s32 %s1108_s10, %s1240_s28 }
  0x2e   : > { %p44_p1 = scmp.ne.s32.totalorder %s1104_s9, %s1100_s30  ;;  %p35_p2 = scmp.eq.s32.totalorder %s34_s15, 0 }
  0x2f   : > { %p45_p6 = scmp.eq.s32.totalorder %s1108_s10, 0  ;;  %p1436_p12 = scmp.eq.s32.totalorder %s1189_s7, 1 }
  0x30   : > { %p876_p7 = scmp.lt.s32.totalorder %s1108_s10, 2  ;;  %s290_s18 = sand.u32 1, %s1104_s9  }
  0x31   : > { %p1250_p3 = por %p1436_p12, %p44_p1  ;;  %p46_p9 = por %p45_p6, %p44_p1 }
  0x32   : > { %862 = dma.hbm_to_vmem [thread:$0]  (!%p1217_p11), %s1435_s4, 512, %s268_s19, [#allocation10], %s1112_s21, %s1112_s21, %s1113_s22  }
  0x33   : > { %s1437_s16 = scalar_select %p1250_p3, 1, 0 }
  0x34   : > { %s1256_s17 = scalar_select %p35_p2, %s1104_s9, %s37_s11  }
  0x35   : > { %s1259_s19 = sshll.u32 %s290_s18, 3  ;;  %s785_s20 = sshll.u32 %s1108_s10, 7 }
  0x36   : > { %1438 = sst [smem:[#allocation18_spill]] %s1256_s17  ;;  %s1265_s23 = scalar_lea.hbm %s1413_s0, %s785_s20 }
  0x37   : > { %s294_s24 = scalar_lea.vmem [#allocation3], %s1259_s19  ;;  %p1270_p11 = pnand %p876_p7, %p46_p9 }
  0x38   : > { %s301_s25 = sshll.u32 %s294_s24, 4  ;;  %s1277_s15 = scalar_lea.hbm %s1414_s1, %s785_s20  ;;  %s1268_s25 = int_to_ptr.vmem [resolvable:$true] %s301_s25 }
  0x39   : > { %s308_s21 = sand.u32 1, %s1108_s10   ;;  %s291_s22 = scalar_lea.sflag [#allocation4], %s290_s18 }
  0x3a   : > { %s976_s2 = scalar_lea.hbm %s1265_s23, 128  ;;  %p978_p0 = pneg %p1270_p11 }
  0x3b   : > { %p977_p13 = scmp.ne.s32.totalorder %s1265_s23, %s976_s2  ;;  %s981_s17 = scalar_lea.hbm %s1413_s0, 256 }
  0x3c   : > { %p982_p1 = scmp.lt.s32.totalorder %s1265_s23, %s1413_s0  ;;  %p983_p2 = scmp.lt.s32.totalorder %s981_s17, %s976_s2 }
  0x3d   : > { %p979_p5 = pnand %p978_p0, %p977_p13 }
  0x3e   : > { %p984_p6 = por %p983_p2, %p982_p1 }
  0x3f   : > { %p980_p10 = pneg %p979_p5 }
  0x41   : > { %p985_p12 = pnand %p984_p6, %p980_p10 }
  0x43   : > { %988 = shalt.err (!%p985_p12)
}
  0x44   : > { %s989_s18 = scalar_lea.vmem %s1268_s25, 128  ;;  %s1114_s4 = smov [#allocation3]  }
  0x45   : > { %p990_p7 = scmp.ne.s32.totalorder %s1268_s25, %s989_s18  ;;  %s994_s20 = sshll.u32 %s1114_s4, 4  ;;  %s995_s20 = int_to_ptr.vmem [resolvable:$false] %s994_s20 }
  0x46   : > { %s996_s11 = scalar_lea.vmem %s995_s20, 256  ;;  %p997_p5 = scmp.lt.s32.totalorder %s1268_s25, %s995_s20 }
  0x47   : > { %p992_p9 = pnand %p990_p7, %p978_p0  ;;  %p998_p3 = scmp.lt.s32.totalorder %s996_s11, %s989_s18 }
  0x49   : > { %p993_p13 = pneg %p992_p9  ;;  %p999_p4 = por %p998_p3, %p997_p5 }
  0x4b   : > { %p1000_p1 = pnand %p999_p4, %p993_p13 }
  0x4d   : > { %1003 = shalt.err (!%p1000_p1)
}
  0x4e   : > { %866 = dma.hbm_to_vmem [thread:$0]  (!%p1270_p11), %s1265_s23, 128, %s1268_s25, %s291_s22  }
  0x4f   : > { %s312_s2 = scalar_lea.vmem [#allocation6], %s1259_s19  ;;  %s309_s17 = scalar_lea.sflag [#allocation7], %s308_s21 }
  0x50   : > { %s319_s9 = sshll.u32 %s312_s2, 4  ;;  %s1004_s24 = scalar_lea.hbm %s1277_s15, 128  ;;  %s320_s9 = int_to_ptr.vmem [resolvable:$true] %s319_s9 }
  0x51   : > { %p1005_p3 = scmp.ne.s32.totalorder %s1277_s15, %s1004_s24  ;;  %s1009_s4 = scalar_lea.hbm %s1414_s1, 256 }
  0x52   : > { %p1010_p2 = scmp.lt.s32.totalorder %s1277_s15, %s1414_s1  ;;  %p1011_p6 = scmp.lt.s32.totalorder %s1009_s4, %s1004_s24 }
  0x53   : > { %p1007_p4 = pnand %p1005_p3, %p978_p0 }
  0x54   : > { %p1012_p12 = por %p1011_p6, %p1010_p2 }
  0x55   : > { %p1008_p10 = pneg %p1007_p4 }
  0x57   : > { %p1013_p7 = pnand %p1012_p12, %p1008_p10 }
  0x59   : > { %1016 = shalt.err (!%p1013_p7)
}
  0x5a   : > { %s1017_s19 = scalar_lea.vmem %s320_s9, 128  ;;  %s1115_s23 = smov [#allocation6]  }
  0x5b   : > { %p1018_p9 = scmp.ne.s32.totalorder %s320_s9, %s1017_s19  ;;  %s1022_s25 = sshll.u32 %s1115_s23, 4  ;;  %s1023_s25 = int_to_ptr.vmem [resolvable:$false] %s1022_s25 }
  0x5c   : > { %s1024_s21 = scalar_lea.vmem %s1023_s25, 256  ;;  %p1025_p1 = scmp.lt.s32.totalorder %s320_s9, %s1023_s25 }
  0x5d   : > { %p1020_p13 = pnand %p1018_p9, %p978_p0  ;;  %p1026_p3 = scmp.lt.s32.totalorder %s1024_s21, %s1017_s19 }
  0x5f   : > { %p1021_p5 = pneg %p1020_p13  ;;  %p1027_p4 = por %p1026_p3, %p1025_p1 }
  0x61   : > { %p1028_p8 = pnand %p1027_p4, %p1021_p5 }
  0x63   : > { %1031 = shalt.err (!%p1028_p8)
}
  0x64   : > { %869 = dma.hbm_to_vmem [thread:$0]  (!%p1270_p11), %s1277_s15, 128, %s320_s9, %s309_s17  }
  0x65   : > { %p1440_p10 = scmp.ne.s32.totalorder %s1432_s14, 0 }
  0x66   : > { %s1328_s22 = sand.u32 (!%p1440_p10), 1, %s1100_s30   ;;  %p1441_p0 = scmp.ne.s32.totalorder (!%p1440_p10), %s1430_s12, 0 }
  0x67   : > { %328 = sbr.rel (%p1440_p10) target bundleno = 572 (0x23c), region = 52  ;;  %s789_s2 = sshll.u32 (!%p1440_p10), %s1328_s22, 3 }
  0x68   : > { %s331_s24 = scalar_lea.sflag (!%p1440_p10), [#allocation4], %s1328_s22  ;;  %s1332_s27 = scalar_lea.vmem (!%p1440_p10), [#allocation3], %s789_s2 }
  0x6c   : > { %1075 = dma.done.wait (%p1441_p0), %s331_s24, 128  }
  0x6d   : > { %1077 = vsyncadd (%p1441_p0), %s331_s24, 4294967168  ;;  %s339_s26 = sand.u32 1, %s1189_s7   ;;  %s1339_s15 = scalar_lea.vmem [#allocation6], %s789_s2 }
  0x6e   : > { %s340_s14 = scalar_lea.sflag [#allocation7], %s339_s26 }
  0x6f   : > { %1079 = dma.done.wait (%p1441_p0), %s340_s14, 128  }
  0x70   : > { %1081 = vsyncadd (%p1441_p0), %s340_s14, 4294967168  ;;  %p1442_p8 = scmp.eq.s32.totalorder %s1189_s7, 0 }
  0x72   : > { %1083 = dma.done.wait (%p1442_p8), [#allocation7], 512   ;;  %p1443_p11 = pmov %p1442_p8 }
  0x73   : > { %p1444_p2 = pmov %p1442_p8 }
  0x74   : > { %1085 = vsyncadd (%p1443_p11), [#allocation7], 4294966784 }
  0x75   : > { %1087 = dma.done.wait (%p1444_p2), [#allocation10], 512   ;;  %p1445_p6 = pmov %p1444_p2 }
  0x76   : > { %v1116_v1 = vmov 0.0   ;;  %vm1117_vm0 = vmmov 0   ;;  %v392_v2 = vld [vmem:[#allocation8 + $0x18] sm:$0xff]  ;;  %v391_v4 = vld [vmem:[#allocation8 + $0x10] sm:$0xff]  ;;  %v390_v6 = vld [vmem:[#allocation8 + $0x8] sm:$0xff]  ;;  %vm400_vm1 = vcmask 261120   ;;  %v576_v31 = vlaneseq }
  0x77   : > { %1089 = vsyncadd (%p1445_p6), [#allocation10], 4294966784  ;;  %815 = vmatprep.subr.mxu0 %v1116_v1  ;;  %826 = vmatprep.subr.mxu1 %v1116_v1  ;;  %v478_v3 = vld [vmem:[#allocation9 + $0x18] sm:$0xff]  ;;  %v477_v5 = vld [vmem:[#allocation9 + $0x10] sm:$0xff]  ;;  %v1118_v13 = vmov 0   ;;  %s800_s11 = sshll.u32 %s1189_s7, 4 }
  0x78   : > { %823 = vmatprep.mubr.msk.f32.mxu0 %vm1117_vm0, %v1116_v1  ;;  %834 = vmatprep.mubr.msk.f32.mxu1 %vm1117_vm0, %v1116_v1  ;;  %v476_v7 = vld [vmem:[#allocation9 + $0x8] sm:$0xff]  ;;  %v389_v8 = vld [vmem:[#allocation8] sm:$0xff]  ;;  %v474_v11 = vld [vmem:[%s1339_s15] sm:$0xff]  ;;  %v577_v32 = vshrl.u32 %v576_v31, 7  ;;  %s387_s19 = scalar_lea.vmem [#allocation11], %s1328_s22  ;;  %vm656_vm2 = vcmask 57344   ;;  %s1376_s2 = scalar_lea.hbm %s1421_s8, %s800_s11 }
  0x79   : > { %816 = vmatpush3.msra.mxu0 %v392_v2  ;;  %827 = vmatpush3.msra.mxu1 %v478_v3  ;;  %v475_v9 = vld [vmem:[#allocation9] sm:$0xff]  ;;  %v570_v12 = vld [vmem:[#allocation2] sm:$0x1]  ;;  %s671_s23 = sshll.u32 %s387_s19, 4  ;;  %s659_s24 = scalar_lea.sflag [#allocation5], %s1328_s22  ;;  %s672_s23 = int_to_ptr.vmem [resolvable:$true] %s671_s23 }
  0x7a   : > { %817 = vmatprep.subr.mxu0 %v1116_v1  ;;  %828 = vmatprep.subr.mxu1 %v1116_v1  ;;  %v388_v10 = vld [vmem:[%s1332_s27] sm:$0xff]  ;;  %v793_v14 = vld [vmem:[%s1416_s3] ss:$0 sm:$0xff]  ;;  %v578_v33 = vsub.s32 0, %v577_v32  ;;  %s1032_s27 = scalar_lea.vmem %s672_s23, 16  ;;  %p1446_p7 = scmp.ne.s32.totalorder %s1437_s16, 0 }
  0x7b   : > { %818 = vmatpush3.msra.mxu0 %v391_v4  ;;  %829 = vmatpush3.msra.mxu1 %v477_v5  ;;  %v795_v15 = vld [vmem:[%s1418_s5] ss:$0 sm:$0xff]  ;;  %p1033_p12 = scmp.ne.s32.totalorder %s672_s23, %s1032_s27  ;;  %s1119_s7 = smov [#allocation11]  }
  0x7c   : > { %819 = vmatprep.subr.mxu0 %v1116_v1  ;;  %830 = vmatprep.subr.mxu1 %v1116_v1  ;;  %v569_v30 = vld [vmem:[%s1419_s6] sm:$0x1]  ;;  %s1036_s26 = sshll.u32 %s1119_s7, 4  ;;  %s1037_s26 = int_to_ptr.vmem [resolvable:$false] %s1036_s26 }
  0x7d   : > { %820 = vmatpush3.msra.mxu0 %v390_v6  ;;  %831 = vmatpush3.msra.mxu1 %v476_v7  ;;  %p1034_p9 = pnand %p1033_p12, %p1446_p7  ;;  %s1038_s14 = scalar_lea.vmem %s1037_s26, 32 }
  0x7e   : > { %821 = vmatprep.subr.mxu0 %v1116_v1  ;;  %832 = vmatprep.subr.mxu1 %v1116_v1  ;;  %p1039_p5 = scmp.lt.s32.totalorder %s672_s23, %s1037_s26  ;;  %p1040_p1 = scmp.lt.s32.totalorder %s1038_s14, %s1032_s27 }
  0x7f   : > { %822 = vmatpush3.msra.mxu0 %v389_v8  ;;  %833 = vmatpush3.msra.mxu1 %v475_v9  ;;  %p1035_p13 = pneg %p1034_p9 }
  0x80   : > { %824 = vmatmul.mubr.msk.f32.vlgmr.msra.gmra.mxu0 %vm400_vm1, %v388_v10  ;;  %835 = vmatmul.mubr.msk.f32.vlgmr.msra.gmra.mxu1 %vm400_vm1, %v474_v11  ;;  %p1041_p3 = por %p1040_p1, %p1039_p5 }
  0x81   : > { %837 = vmatprep.subr.mxu0 %v1116_v1  ;;  %839 = vmatprep.mubr.msk.f32.mxu0 %vm1117_vm0, %v1116_v1 }
  0x82   : > { %919 = vset.pattern.permute.xlu0 %v1118_v13  ;;  %p1042_p4 = pnand %p1041_p3, %p1035_p13 }
  0x83   : > { %573 = vperm.xlu0 %919, %v570_v12  }
  0xfe   : > { %v574_v34 = vpop.permute.xlu0 %573 }
  0xff   : > { %v579_v35 = vrot.slane %v574_v34, %v578_v33 }
 0x140   : > { %v470_v16 = vpop.f32.mrf.mxu0  ;;  %v555_v17 = vpop.f32.mrf.mxu1 }
 0x141   : > { %v471_v18 = vadd.f32 %v793_v14, %v470_v16  ;;  %v556_v19 = vadd.f32 %v795_v15, %v555_v17 }
 0x142   : > { %v825_v20 = vpop.f32.mrf.mxu0  ;;  %v836_v21 = vpop.f32.mrf.mxu1 }
 0x143   : > { %v559_v22 = vadd.f32 %v556_v19, %v471_v18  ;;  %v566_v26 = vsub.f32 %v471_v18, %v556_v19 }
 0x145   : > { %v797_v23 = vmul.f32 -1.442695, %v559_v22 }
 0x147   : > { %920 = vpow2.f32 %v797_v23 }
 0x154   : > { %v921_v24 = vpop.eup %920 }
 0x155   : > { %v563_v25 = vadd.f32 1.0, %v921_v24 }
 0x157   : > { %922 = vrcp.f32 %v563_v25 }
 0x164   : > { %v923_v27 = vpop.eup %922 }
 0x165   : > { %v567_v28 = vmul.f32 %v923_v27, %v566_v26 }
 0x167   : > { %v568_v29 = vadd.f32 %v567_v28, %v556_v19 }
 0x169   : > { %838 = vmatpush3.xpose.msk.msra.mxu0 %vm400_vm1, %v568_v29 }
 0x16c   : > { %840 = vmatmul.mubr.msk.f32.vlgmr.msra.gmra.mxu0 %vm400_vm1, %v569_v30 }
 0x22c   : > { %v652_v36 = vpop.f32.mrf.mxu0 }
 0x22d   : > { %v653_v37 = vadd.f32 %v652_v36, %v579_v35 }
 0x22e   : > { %v841_v38 = vpop.f32.mrf.mxu0 }
 0x22f   : > { %657 = vst.msk [vmem:[%s387_s19] sm:$0x1] %vm656_vm2, %v653_v37 }
 0x230   : > { %1045 = shalt.err (!%p1042_p4)
}
 0x231   : > { %s1046_s15 = scalar_lea.hbm %s1376_s2, 16  ;;  %s1050_s9 = scalar_lea.hbm %s1421_s8, 32 }
 0x232   : > { %p1047_p10 = scmp.ne.s32.totalorder %s1376_s2, %s1046_s15  ;;  %p1051_p11 = scmp.lt.s32.totalorder %s1376_s2, %s1421_s8 }
 0x233   : > { %p1052_p2 = scmp.lt.s32.totalorder %s1050_s9, %s1046_s15 }
 0x234   : > { %p1048_p0 = pnand %p1047_p10, %p1446_p7 }
 0x235   : > { %p1053_p6 = por %p1052_p2, %p1051_p11 }
 0x236   : > { %p1049_p8 = pneg %p1048_p0 }
 0x238   : > { %p1054_p12 = pnand %p1053_p6, %p1049_p8 }
 0x23a   : > { %1057 = shalt.err (!%p1054_p12)
}
 0x23b   : > { %854 = dma.vmem_to_hbm [thread:$0]  (%p1446_p7), %s672_s23, 16, %s1376_s2, %s659_s24  }
 0x23c PF: > { %s683_s4 = sand.u32 1, %s1096_s29   ;;  %p1447_p9 = scmp.ne.s32.totalorder %s1431_s13, 0 }
 0x23d   : > { %p1448_p13 = scmp.ge.s32.totalorder %s1108_s10, 2  ;;  %s684_s20 = scalar_lea.sflag [#allocation5], %s683_s4 }
 0x23f   : > { %p871_p5 = pnand %p1448_p13, %p1447_p9 }
 0x241   : > { %p872_p1 = pneg %p871_p5 }
 0x243   : > { %1091 = dma.done.wait (%p872_p1), %s684_s20, 16  }
 0x244   : > { %1093 = vsyncadd (%p872_p1), %s684_s20, 4294967280  ;;  %s1449_s11 = sld [smem:[#allocation17_spill]]  ;;  %p27_p3 = scmp.ge.s32.totalorder %s1240_s28, 4  }
 0x245   : > { %s1450_s9 = sld [smem:[#allocation18_spill]]  ;;  %s1451_s29 = smov %s1100_s30 }
 0x246   : > { %s1453_s10 = smov %s1240_s28  ;;  %29 = sbr.rel (!%p27_p3) target bundleno = 11 (0xb), region = 118 }
 0x24a   : > { %s1452_s30 = smov %s1449_s11 }
 0x24b   :  { %688 = vsyncpa [#allocation4], 1 }
 0x24c   :  { %690 = vsyncpa [#allocation4 + $0x1], 1 }
 0x24d   :  { %691 = vsyncpa [#allocation7], 1 }
 0x24e   :  { %693 = vsyncpa [#allocation7 + $0x1], 1 }
 0x24f   :  { %694 = vsyncpa [#allocation10], 1 }
 0x250   :  { %695 = vsyncpa [#allocation5], 1 }
 0x251   :  { %697 = vsyncpa [#allocation5 + $0x1], 1 }

// kernel: tpu_custom_call.1
= control target key start
LH: loop header
LB: loop body
LE: loop exit
PB: predicated region body
PF: predicated region fallthrough
CT: control target
= control target key end

     0   :  { %s1413_s0 = inlined_call_operand.hbm [shape: f32[16,32], index: 0, kind: input, shape index: {}]   ;;  %s1414_s1 = inlined_call_operand.hbm [shape: f32[16,32], index: 1, kind: input, shape index: {}]   ;;  %s1415_s2 = inlined_call_operand.hbm [shape: f32[32,32], index: 2, kind: input, shape index: {}]   ;;  %s1416_s3 = inlined_call_operand.vmem [shape: f32[1,32], index: 3, kind: input, shape index: {}]   ;;  %s1417_s4 = inlined_call_operand.hbm [shape: f32[32,32], index: 4, kind: input, shape index: {}]   ;;  %s1418_s5 = inlined_call_operand.vmem [shape: f32[1,32], index: 5, kind: input, shape index: {}]   ;;  %s1419_s6 = inlined_call_operand.vmem [shape: f32[1,32], index: 6, kind: input, shape index: {}]   ;;  %s1420_s7 = inlined_call_operand.<no memory space> [shape: f32[1,1], index: 7, kind: input, shape index: {}]   ;;  %s1421_s8 = inlined_call_operand.hbm [shape: f32[2,1,8], index: 8, kind: output, shape index: {}]  }
   0x1   :  { %1427 = sst [smem:[#allocation19_spill]] %s1415_s2  ;;  %v13_v0 = vstv %s1420_s7 }
   0x2   :  { %1428 = sst [smem:[#allocation20_spill]] %s1417_s4  ;;  %14 = vst [vmem:[#allocation2] sm:$0x1] %v13_v0 }
   0x3   :  { %15 = vsyncpa [#allocation4], 0 }
   0x4   :  { %17 = vsyncpa [#allocation4 + $0x1], 0 }
   0x5   :  { %18 = vsyncpa [#allocation7], 0 }
   0x6   :  { %20 = vsyncpa [#allocation7 + $0x1], 0 }
   0x7   :  { %21 = vsyncpa [#allocation10], 0 }
   0x8   :  { %22 = vsyncpa [#allocation5], 0 }
   0x9   :  { %24 = vsyncpa [#allocation5 + $0x1], 0  ;;  %s1168_s29 = smov 0   ;;  %s1170_s30 = smov 0  }
   0xa   :  { %s1172_s9 = smov 0   ;;  %s1174_s10 = smov 0  }
   0xb LB: > { %1429 = sst [smem:[#allocation17_spill]] %s1104_s9  ;;  %s1189_s7 = sadd.s32 4294967295, %s1108_s10   ;;  %s1108_s10 = sphi %s1174_s10, %s1453_s10   ;;  %s1104_s9 = sphi %s1172_s9, %s1450_s9   ;;  %s1100_s30 = sphi %s1170_s30, %s1452_s30   ;;  %s1096_s29 = sphi %s1168_s29, %s1451_s29  }
   0xc   : > { %s779_s11 = sadd.s32 4294967294, %s1108_s10   ;;  %p50_p0 = scmp.ne.s32.totalorder %s1100_s30, %s1096_s29 }
   0xd   : > { %p1422_p1 = scmp.eq.s32.totalorder %s1189_s7, 0  ;;  %p232_p3 = scmp.eq.s32.totalorder %s779_s11, 1 }
   0xe   : > { %p780_p5 = scmp.ge.s32.totalorder %s1108_s10, 1  ;;  %p239_p7 = scmp.lt.s32.totalorder %s1108_s10, 3 }
   0xf   : > { %p1198_p4 = por %p1422_p1, %p50_p0  ;;  %p1203_p6 = por %p232_p3, %p50_p0 }
  0x10   : > { %p1208_p8 = pnand %p780_p5, %p239_p7  ;;  %s1110_s15 = smov [#allocation8]  }
  0x11   : > { %s1430_s12 = scalar_select %p1198_p4, 1, 0 }
  0x12   : > { %s1431_s13 = scalar_select %p1203_p6, 1, 0 }
  0x13   : > { %s1432_s14 = scalar_select %p1208_p8, 1, 0 }
  0x14   : > { %s251_s16 = sshll.u32 %s1110_s15, 4  ;;  %p856_p9 = pneg %p1208_p8  ;;  %s252_s16 = int_to_ptr.vmem [resolvable:$true] %s251_s16 }
  0x15   : > { %s1111_s18 = smov [#allocation9]   ;;  %s935_s20 = scalar_lea.vmem %s252_s16, 512 }
  0x16   : > { %p1217_p11 = pnand %p856_p9, %p1422_p1  ;;  %s267_s19 = sshll.u32 %s1111_s18, 4  ;;  %s268_s19 = int_to_ptr.vmem [resolvable:$true] %s267_s19 }
  0x17   : > { %p936_p13 = scmp.ne.s32.totalorder %s252_s16, %s935_s20  ;;  %p943_p5 = scmp.lt.s32.totalorder %s252_s16, %s252_s16 }
  0x18   : > { %p926_p12 = pneg %p1217_p11  ;;  %p944_p7 = scmp.lt.s32.totalorder %s935_s20, %s935_s20 }
  0x1a   : > { %p938_p0 = pnand %p936_p13, %p926_p12  ;;  %p945_p10 = por %p944_p7, %p943_p5 }
  0x1c   : > { %p939_p3 = pneg %p938_p0 }
  0x1e   : > { %p946_p9 = pnand %p945_p10, %p939_p3 }
  0x20   : > { %949 = shalt.err (!%p946_p9)
}
  0x21   : > { %s1112_s21 = smov 128   ;;  %s1113_s22 = smov 8  }
  0x22   : > { %s1434_s2 = sld [smem:[#allocation19_spill]]  ;;  %s961_s25 = scalar_lea.vmem %s268_s19, 512 }
  0x23   : > { %p962_p1 = scmp.ne.s32.totalorder %s268_s19, %s961_s25  ;;  %p969_p2 = scmp.lt.s32.totalorder %s268_s19, %s268_s19 }
  0x24   : > { %p970_p6 = scmp.lt.s32.totalorder %s961_s25, %s961_s25 }
  0x25   : > { %p964_p13 = pnand %p962_p1, %p926_p12 }
  0x26   : > { %p971_p5 = por %p970_p6, %p969_p2 }
  0x27   : > { %p965_p0 = pneg %p964_p13 }
  0x28   : > { %859 = dma.hbm_to_vmem [thread:$0]  (!%p1217_p11), %s1434_s2, 512, %s252_s16, [#allocation7], %s1112_s21, %s1112_s21, %s1113_s22  }
  0x29   : > { %p972_p10 = pnand %p971_p5, %p965_p0 }
  0x2b   : > { %975 = shalt.err (!%p972_p10)
}
  0x2c   : > { %s1435_s4 = sld [smem:[#allocation20_spill]]  ;;  %s1240_s28 = sadd.s32 1, %s1108_s10  }
  0x2d   : > { %s37_s11 = sadd.s32 1, %s1104_s9  ;;  %s34_s15 = ssub.s32 %s1108_s10, %s1240_s28 }
  0x2e   : > { %p44_p1 = scmp.ne.s32.totalorder %s1104_s9, %s1100_s30  ;;  %p35_p2 = scmp.eq.s32.totalorder %s34_s15, 0 }
  0x2f   : > { %p45_p6 = scmp.eq.s32.totalorder %s1108_s10, 0  ;;  %p1436_p12 = scmp.eq.s32.totalorder %s1189_s7, 1 }
  0x30   : > { %p876_p7 = scmp.lt.s32.totalorder %s1108_s10, 2  ;;  %s290_s18 = sand.u32 1, %s1104_s9  }
  0x31   : > { %p1250_p3 = por %p1436_p12, %p44_p1  ;;  %p46_p9 = por %p45_p6, %p44_p1 }
  0x32   : > { %862 = dma.hbm_to_vmem [thread:$0]  (!%p1217_p11), %s1435_s4, 512, %s268_s19, [#allocation10], %s1112_s21, %s1112_s21, %s1113_s22  }
  0x33   : > { %s1437_s16 = scalar_select %p1250_p3, 1, 0 }
  0x34   : > { %s1256_s17 = scalar_select %p35_p2, %s1104_s9, %s37_s11  }
  0x35   : > { %s1259_s19 = sshll.u32 %s290_s18, 3  ;;  %s785_s20 = sshll.u32 %s1108_s10, 7 }
  0x36   : > { %1438 = sst [smem:[#allocation18_spill]] %s1256_s17  ;;  %s1265_s23 = scalar_lea.hbm %s1413_s0, %s785_s20 }
  0x37   : > { %s294_s24 = scalar_lea.vmem [#allocation3], %s1259_s19  ;;  %p1270_p11 = pnand %p876_p7, %p46_p9 }
  0x38   : > { %s301_s25 = sshll.u32 %s294_s24, 4  ;;  %s1277_s15 = scalar_lea.hbm %s1414_s1, %s785_s20  ;;  %s1268_s25 = int_to_ptr.vmem [resolvable:$true] %s301_s25 }
  0x39   : > { %s308_s21 = sand.u32 1, %s1108_s10   ;;  %s291_s22 = scalar_lea.sflag [#allocation4], %s290_s18 }
  0x3a   : > { %s976_s2 = scalar_lea.hbm %s1265_s23, 128  ;;  %p978_p0 = pneg %p1270_p11 }
  0x3b   : > { %p977_p13 = scmp.ne.s32.totalorder %s1265_s23, %s976_s2  ;;  %s981_s17 = scalar_lea.hbm %s1413_s0, 256 }
  0x3c   : > { %p982_p1 = scmp.lt.s32.totalorder %s1265_s23, %s1413_s0  ;;  %p983_p2 = scmp.lt.s32.totalorder %s981_s17, %s976_s2 }
  0x3d   : > { %p979_p5 = pnand %p978_p0, %p977_p13 }
  0x3e   : > { %p984_p6 = por %p983_p2, %p982_p1 }
  0x3f   : > { %p980_p10 = pneg %p979_p5 }
  0x41   : > { %p985_p12 = pnand %p984_p6, %p980_p10 }
  0x43   : > { %988 = shalt.err (!%p985_p12)
}
  0x44   : > { %s989_s18 = scalar_lea.vmem %s1268_s25, 128  ;;  %s1114_s4 = smov [#allocation3]  }
  0x45   : > { %p990_p7 = scmp.ne.s32.totalorder %s1268_s25, %s989_s18  ;;  %s994_s20 = sshll.u32 %s1114_s4, 4  ;;  %s995_s20 = int_to_ptr.vmem [resolvable:$false] %s994_s20 }
  0x46   : > { %s996_s11 = scalar_lea.vmem %s995_s20, 256  ;;  %p997_p5 = scmp.lt.s32.totalorder %s1268_s25, %s995_s20 }
  0x47   : > { %p992_p9 = pnand %p990_p7, %p978_p0  ;;  %p998_p3 = scmp.lt.s32.totalorder %s996_s11, %s989_s18 }
  0x49   : > { %p993_p13 = pneg %p992_p9  ;;  %p999_p4 = por %p998_p3, %p997_p5 }
  0x4b   : > { %p1000_p1 = pnand %p999_p4, %p993_p13 }
  0x4d   : > { %1003 = shalt.err (!%p1000_p1)
}
  0x4e   : > { %866 = dma.hbm_to_vmem [thread:$0]  (!%p1270_p11), %s1265_s23, 128, %s1268_s25, %s291_s22  }
  0x4f   : > { %s312_s2 = scalar_lea.vmem [#allocation6], %s1259_s19  ;;  %s309_s17 = scalar_lea.sflag [#allocation7], %s308_s21 }
  0x50   : > { %s319_s9 = sshll.u32 %s312_s2, 4  ;;  %s1004_s24 = scalar_lea.hbm %s1277_s15, 128  ;;  %s320_s9 = int_to_ptr.vmem [resolvable:$true] %s319_s9 }
  0x51   : > { %p1005_p3 = scmp.ne.s32.totalorder %s1277_s15, %s1004_s24  ;;  %s1009_s4 = scalar_lea.hbm %s1414_s1, 256 }
  0x52   : > { %p1010_p2 = scmp.lt.s32.totalorder %s1277_s15, %s1414_s1  ;;  %p1011_p6 = scmp.lt.s32.totalorder %s1009_s4, %s1004_s24 }
  0x53   : > { %p1007_p4 = pnand %p1005_p3, %p978_p0 }
  0x54   : > { %p1012_p12 = por %p1011_p6, %p1010_p2 }
  0x55   : > { %p1008_p10 = pneg %p1007_p4 }
  0x57   : > { %p1013_p7 = pnand %p1012_p12, %p1008_p10 }
  0x59   : > { %1016 = shalt.err (!%p1013_p7)
}
  0x5a   : > { %s1017_s19 = scalar_lea.vmem %s320_s9, 128  ;;  %s1115_s23 = smov [#allocation6]  }
  0x5b   : > { %p1018_p9 = scmp.ne.s32.totalorder %s320_s9, %s1017_s19  ;;  %s1022_s25 = sshll.u32 %s1115_s23, 4  ;;  %s1023_s25 = int_to_ptr.vmem [resolvable:$false] %s1022_s25 }
  0x5c   : > { %s1024_s21 = scalar_lea.vmem %s1023_s25, 256  ;;  %p1025_p1 = scmp.lt.s32.totalorder %s320_s9, %s1023_s25 }
  0x5d   : > { %p1020_p13 = pnand %p1018_p9, %p978_p0  ;;  %p1026_p3 = scmp.lt.s32.totalorder %s1024_s21, %s1017_s19 }
  0x5f   : > { %p1021_p5 = pneg %p1020_p13  ;;  %p1027_p4 = por %p1026_p3, %p1025_p1 }
  0x61   : > { %p1028_p8 = pnand %p1027_p4, %p1021_p5 }
  0x63   : > { %1031 = shalt.err (!%p1028_p8)
}
  0x64   : > { %869 = dma.hbm_to_vmem [thread:$0]  (!%p1270_p11), %s1277_s15, 128, %s320_s9, %s309_s17  }
  0x65   : > { %p1440_p10 = scmp.ne.s32.totalorder %s1432_s14, 0 }
  0x66   : > { %s1328_s22 = sand.u32 (!%p1440_p10), 1, %s1100_s30   ;;  %p1441_p0 = scmp.ne.s32.totalorder (!%p1440_p10), %s1430_s12, 0 }
  0x67   : > { %328 = sbr.rel (%p1440_p10) target bundleno = 572 (0x23c), region = 52  ;;  %s789_s2 = sshll.u32 (!%p1440_p10), %s1328_s22, 3 }
  0x68   : > { %s331_s24 = scalar_lea.sflag (!%p1440_p10), [#allocation4], %s1328_s22  ;;  %s1332_s27 = scalar_lea.vmem (!%p1440_p10), [#allocation3], %s789_s2 }
  0x6c   : > { %1075 = dma.done.wait (%p1441_p0), %s331_s24, 128  }
  0x6d   : > { %1077 = vsyncadd (%p1441_p0), %s331_s24, 4294967168  ;;  %s339_s26 = sand.u32 1, %s1189_s7   ;;  %s1339_s15 = scalar_lea.vmem [#allocation6], %s789_s2 }
  0x6e   : > { %s340_s14 = scalar_lea.sflag [#allocation7], %s339_s26 }
  0x6f   : > { %1079 = dma.done.wait (%p1441_p0), %s340_s14, 128  }
  0x70   : > { %1081 = vsyncadd (%p1441_p0), %s340_s14, 4294967168  ;;  %p1442_p8 = scmp.eq.s32.totalorder %s1189_s7, 0 }
  0x72   : > { %1083 = dma.done.wait (%p1442_p8), [#allocation7], 512   ;;  %p1443_p11 = pmov %p1442_p8 }
  0x73   : > { %p1444_p2 = pmov %p1442_p8 }
  0x74   : > { %1085 = vsyncadd (%p1443_p11), [#allocation7], 4294966784 }
  0x75   : > { %1087 = dma.done.wait (%p1444_p2), [#allocation10], 512   ;;  %p1445_p6 = pmov %p1444_p2 }
  0x76   : > { %v1116_v1 = vmov 0.0   ;;  %vm1117_vm0 = vmmov 0   ;;  %v392_v2 = vld [vmem:[#allocation8 + $0x18] sm:$0xff]  ;;  %v391_v4 = vld [vmem:[#allocation8 + $0x10] sm:$0xff]  ;;  %v390_v6 = vld [vmem:[#allocation8 + $0x8] sm:$0xff]  ;;  %vm400_vm1 = vcmask 261120   ;;  %v576_v31 = vlaneseq }
  0x77   : > { %1089 = vsyncadd (%p1445_p6), [#allocation10], 4294966784  ;;  %815 = vmatprep.subr.mxu0 %v1116_v1  ;;  %826 = vmatprep.subr.mxu1 %v1116_v1  ;;  %v478_v3 = vld [vmem:[#allocation9 + $0x18] sm:$0xff]  ;;  %v477_v5 = vld [vmem:[#allocation9 + $0x10] sm:$0xff]  ;;  %v1118_v13 = vmov 0   ;;  %s800_s11 = sshll.u32 %s1189_s7, 4 }
  0x78   : > { %823 = vmatprep.mubr.msk.f32.mxu0 %vm1117_vm0, %v1116_v1  ;;  %834 = vmatprep.mubr.msk.f32.mxu1 %vm1117_vm0, %v1116_v1  ;;  %v476_v7 = vld [vmem:[#allocation9 + $0x8] sm:$0xff]  ;;  %v389_v8 = vld [vmem:[#allocation8] sm:$0xff]  ;;  %v474_v11 = vld [vmem:[%s1339_s15] sm:$0xff]  ;;  %v577_v32 = vshrl.u32 %v576_v31, 7  ;;  %s387_s19 = scalar_lea.vmem [#allocation11], %s1328_s22  ;;  %vm656_vm2 = vcmask 57344   ;;  %s1376_s2 = scalar_lea.hbm %s1421_s8, %s800_s11 }
  0x79   : > { %816 = vmatpush3.msra.mxu0 %v392_v2  ;;  %827 = vmatpush3.msra.mxu1 %v478_v3  ;;  %v475_v9 = vld [vmem:[#allocation9] sm:$0xff]  ;;  %v570_v12 = vld [vmem:[#allocation2] sm:$0x1]  ;;  %s671_s23 = sshll.u32 %s387_s19, 4  ;;  %s659_s24 = scalar_lea.sflag [#allocation5], %s1328_s22  ;;  %s672_s23 = int_to_ptr.vmem [resolvable:$true] %s671_s23 }
  0x7a   : > { %817 = vmatprep.subr.mxu0 %v1116_v1  ;;  %828 = vmatprep.subr.mxu1 %v1116_v1  ;;  %v388_v10 = vld [vmem:[%s1332_s27] sm:$0xff]  ;;  %v793_v14 = vld [vmem:[%s1416_s3] ss:$0 sm:$0xff]  ;;  %v578_v33 = vsub.s32 0, %v577_v32  ;;  %s1032_s27 = scalar_lea.vmem %s672_s23, 16  ;;  %p1446_p7 = scmp.ne.s32.totalorder %s1437_s16, 0 }
  0x7b   : > { %818 = vmatpush3.msra.mxu0 %v391_v4  ;;  %829 = vmatpush3.msra.mxu1 %v477_v5  ;;  %v795_v15 = vld [vmem:[%s1418_s5] ss:$0 sm:$0xff]  ;;  %p1033_p12 = scmp.ne.s32.totalorder %s672_s23, %s1032_s27  ;;  %s1119_s7 = smov [#allocation11]  }
  0x7c   : > { %819 = vmatprep.subr.mxu0 %v1116_v1  ;;  %830 = vmatprep.subr.mxu1 %v1116_v1  ;;  %v569_v30 = vld [vmem:[%s1419_s6] sm:$0x1]  ;;  %s1036_s26 = sshll.u32 %s1119_s7, 4  ;;  %s1037_s26 = int_to_ptr.vmem [resolvable:$false] %s1036_s26 }
  0x7d   : > { %820 = vmatpush3.msra.mxu0 %v390_v6  ;;  %831 = vmatpush3.msra.mxu1 %v476_v7  ;;  %p1034_p9 = pnand %p1033_p12, %p1446_p7  ;;  %s1038_s14 = scalar_lea.vmem %s1037_s26, 32 }
  0x7e   : > { %821 = vmatprep.subr.mxu0 %v1116_v1  ;;  %832 = vmatprep.subr.mxu1 %v1116_v1  ;;  %p1039_p5 = scmp.lt.s32.totalorder %s672_s23, %s1037_s26  ;;  %p1040_p1 = scmp.lt.s32.totalorder %s1038_s14, %s1032_s27 }
  0x7f   : > { %822 = vmatpush3.msra.mxu0 %v389_v8  ;;  %833 = vmatpush3.msra.mxu1 %v475_v9  ;;  %p1035_p13 = pneg %p1034_p9 }
  0x80   : > { %824 = vmatmul.mubr.msk.f32.vlgmr.msra.gmra.mxu0 %vm400_vm1, %v388_v10  ;;  %835 = vmatmul.mubr.msk.f32.vlgmr.msra.gmra.mxu1 %vm400_vm1, %v474_v11  ;;  %p1041_p3 = por %p1040_p1, %p1039_p5 }
  0x81   : > { %837 = vmatprep.subr.mxu0 %v1116_v1  ;;  %839 = vmatprep.mubr.msk.f32.mxu0 %vm1117_vm0, %v1116_v1 }
  0x82   : > { %919 = vset.pattern.permute.xlu0 %v1118_v13  ;;  %p1042_p4 = pnand %p1041_p3, %p1035_p13 }
  0x83   : > { %573 = vperm.xlu0 %919, %v570_v12  }
  0xfe   : > { %v574_v34 = vpop.permute.xlu0 %573 }
  0xff   : > { %v579_v35 = vrot.slane %v574_v34, %v578_v33 }
 0x140   : > { %v470_v16 = vpop.f32.mrf.mxu0  ;;  %v555_v17 = vpop.f32.mrf.mxu1 }
 0x141   : > { %v471_v18 = vadd.f32 %v793_v14, %v470_v16  ;;  %v556_v19 = vadd.f32 %v795_v15, %v555_v17 }
 0x142   : > { %v825_v20 = vpop.f32.mrf.mxu0  ;;  %v836_v21 = vpop.f32.mrf.mxu1 }
 0x143   : > { %v559_v22 = vadd.f32 %v556_v19, %v471_v18  ;;  %v566_v26 = vsub.f32 %v471_v18, %v556_v19 }
 0x145   : > { %v797_v23 = vmul.f32 -1.442695, %v559_v22 }
 0x147   : > { %920 = vpow2.f32 %v797_v23 }
 0x154   : > { %v921_v24 = vpop.eup %920 }
 0x155   : > { %v563_v25 = vadd.f32 1.0, %v921_v24 }
 0x157   : > { %922 = vrcp.f32 %v563_v25 }
 0x164   : > { %v923_v27 = vpop.eup %922 }
 0x165   : > { %v567_v28 = vmul.f32 %v923_v27, %v566_v26 }
 0x167   : > { %v568_v29 = vadd.f32 %v567_v28, %v556_v19 }
 0x169   : > { %838 = vmatpush3.xpose.msk.msra.mxu0 %vm400_vm1, %v568_v29 }
 0x16c   : > { %840 = vmatmul.mubr.msk.f32.vlgmr.msra.gmra.mxu0 %vm400_vm1, %v569_v30 }
 0x22c   : > { %v652_v36 = vpop.f32.mrf.mxu0 }
 0x22d   : > { %v653_v37 = vadd.f32 %v652_v36, %v579_v35 }
 0x22e   : > { %v841_v38 = vpop.f32.mrf.mxu0 }
 0x22f   : > { %657 = vst.msk [vmem:[%s387_s19] sm:$0x1] %vm656_vm2, %v653_v37 }
 0x230   : > { %1045 = shalt.err (!%p1042_p4)
}
 0x231   : > { %s1046_s15 = scalar_lea.hbm %s1376_s2, 16  ;;  %s1050_s9 = scalar_lea.hbm %s1421_s8, 32 }
 0x232   : > { %p1047_p10 = scmp.ne.s32.totalorder %s1376_s2, %s1046_s15  ;;  %p1051_p11 = scmp.lt.s32.totalorder %s1376_s2, %s1421_s8 }
 0x233   : > { %p1052_p2 = scmp.lt.s32.totalorder %s1050_s9, %s1046_s15 }
 0x234   : > { %p1048_p0 = pnand %p1047_p10, %p1446_p7 }
 0x235   : > { %p1053_p6 = por %p1052_p2, %p1051_p11 }
 0x236   : > { %p1049_p8 = pneg %p1048_p0 }
 0x238   : > { %p1054_p12 = pnand %p1053_p6, %p1049_p8 }
 0x23a   : > { %1057 = shalt.err (!%p1054_p12)
}
 0x23b   : > { %854 = dma.vmem_to_hbm [thread:$0]  (%p1446_p7), %s672_s23, 16, %s1376_s2, %s659_s24  }
 0x23c PF: > { %s683_s4 = sand.u32 1, %s1096_s29   ;;  %p1447_p9 = scmp.ne.s32.totalorder %s1431_s13, 0 }
 0x23d   : > { %p1448_p13 = scmp.ge.s32.totalorder %s1108_s10, 2  ;;  %s684_s20 = scalar_lea.sflag [#allocation5], %s683_s4 }
 0x23f   : > { %p871_p5 = pnand %p1448_p13, %p1447_p9 }
 0x241   : > { %p872_p1 = pneg %p871_p5 }
 0x243   : > { %1091 = dma.done.wait (%p872_p1), %s684_s20, 16  }
 0x244   : > { %1093 = vsyncadd (%p872_p1), %s684_s20, 4294967280  ;;  %s1449_s11 = sld [smem:[#allocation17_spill]]  ;;  %p27_p3 = scmp.ge.s32.totalorder %s1240_s28, 4  }
 0x245   : > { %s1450_s9 = sld [smem:[#allocation18_spill]]  ;;  %s1451_s29 = smov %s1100_s30 }
 0x246   : > { %s1453_s10 = smov %s1240_s28  ;;  %29 = sbr.rel (!%p27_p3) target bundleno = 11 (0xb), region = 118 }
 0x24a   : > { %s1452_s30 = smov %s1449_s11 }
 0x24b   :  { %688 = vsyncpa [#allocation4], 1 }
 0x24c   :  { %690 = vsyncpa [#allocation4 + $0x1], 1 }
 0x24d   :  { %691 = vsyncpa [#allocation7], 1 }
 0x24e   :  { %693 = vsyncpa [#allocation7 + $0x1], 1 }
 0x24f   :  { %694 = vsyncpa [#allocation10], 1 }
 0x250   :  { %695 = vsyncpa [#allocation5], 1 }
 0x251   :  { %697 = vsyncpa [#allocation5 + $0x1], 1 }

</bundles_post_ra>
